<compile_context>
chip_gen: v6e
topology: v6e:2x2x1
jax: 0.10.0
libtpu: 0.0.40
codegen_flags: <defaults>
</compile_context>

<pallas_src>
import math
import functools

import jax
import jax.numpy as jnp
from jax import lax
from jax.experimental import pallas as pl
from jax.experimental.pallas import tpu as pltpu


def _round_up(n, m):
    return ((n + m - 1) // m) * m


def _rmsnorm_kernel(x_ref, g_ref, o_ref, *, scale, eps):
    # x_ref: (block_rows, D), g_ref: (1, D), o_ref: (block_rows, D)
    x = x_ref[...].astype(jnp.float32)
    g = g_ref[...].astype(jnp.float32)
    ss = jnp.sum(x * x, axis=-1, keepdims=True)            # (block_rows, 1), XLU reduce
    # F.normalize: x / max(||x||, eps)  ==  x * rsqrt(max(ss, eps^2))   (sqrt monotone)
    inv = scale * lax.rsqrt(jnp.maximum(ss, eps * eps))     # single EUP rsqrt, fused *sqrt(D)
    o_ref[...] = (x * inv * g).astype(o_ref.dtype)


def rms_norm(x, gamma=None, *, eps=1e-12, block_rows=None):
    """RMSNorm forward: F.normalize(x, dim=-1) * sqrt(D) * gamma.

    gamma=None corresponds to the module's scale=False path (gamma == 1).
    """
    *lead, D = x.shape
    scale = math.sqrt(D)
    N = 1
    for d in lead:
        N *= int(d)
    x2 = x.reshape(N, D)

    itemsize = jnp.dtype(x.dtype).itemsize
    if block_rows is None:
        # Target ~0.5 MiB per x-tile (double-buffered in+out stays well under VMEM).
        target_bytes = 512 * 1024
        block_rows = max(8, min(4096, (target_bytes // max(D * itemsize, 1)) // 8 * 8))

    # Tile the row dimension; pad to a tile multiple (padded rows are all-zero ->
    # max(ss, eps^2) keeps them finite; they are sliced off afterwards).
    br = min(block_rows, _round_up(N, 8))
    Np = _round_up(N, br)
    if Np != N:
        x2 = jnp.pad(x2, ((0, Np - N), (0, 0)))

    if gamma is None:
        gamma = jnp.ones((D,), x.dtype)
    g2 = jnp.asarray(gamma).reshape(1, D)

    cost = pl.CostEstimate(
        flops=4 * Np * D,                 # square + reduce-add + 2 scaling muls
        transcendentals=Np,               # one rsqrt per row
        bytes_accessed=2 * Np * D * itemsize + D * itemsize,
    )

    out = pl.pallas_call(
        functools.partial(_rmsnorm_kernel, scale=scale, eps=eps),
        out_shape=jax.ShapeDtypeStruct((Np, D), x.dtype),
        grid_spec=pltpu.PrefetchScalarGridSpec(
            num_scalar_prefetch=0,
            grid=(Np // br,),
            in_specs=[
                pl.BlockSpec((br, D), lambda i: (i, 0)),   # x row-tile
                pl.BlockSpec((1, D), lambda i: (0, 0)),    # gamma (constant across steps)
            ],
            out_specs=pl.BlockSpec((br, D), lambda i: (i, 0)),
        ),
        compiler_params=pltpu.CompilerParams(
            dimension_semantics=("parallel",),             # megacore-shardable
        ),
        cost_estimate=cost,
    )(x2, g2)

    if Np != N:
        out = out[:N]
    return out.reshape(*lead, D)


def rms_norm_ref(x, gamma=None, *, eps=1e-12):
    # Pure-JAX reference matching torch: F.normalize(x, dim=-1) * sqrt(D) * gamma
    D = x.shape[-1]
    xf = x.astype(jnp.float32)
    norm = jnp.sqrt(jnp.sum(xf * xf, axis=-1, keepdims=True))
    denom = jnp.maximum(norm, eps)
    out = xf / denom * math.sqrt(D)
    if gamma is not None:
        out = out * gamma.astype(jnp.float32)
    return out.astype(x.dtype)


if __name__ == "__main__":
    key = jax.random.PRNGKey(0)
    kx, kg, kx2 = jax.random.split(key, 3)

    # x is (batch, seq, dim); dim chosen lane-dense (multiple of 128).
    B, S, D = 2, 8, 128
    x = jax.random.normal(kx, (B, S, D), jnp.float32)
    gamma = 1.0 + 0.1 * jax.random.normal(kg, (D,), jnp.float32)   # scale=True parameter

    out = rms_norm(x, gamma)
    jax.block_until_ready(out)
    ref = rms_norm_ref(x, gamma)
    assert out.shape == x.shape and out.dtype == x.dtype
    assert jnp.allclose(out, ref, atol=1e-5, rtol=1e-5)

    # scale=False branch (gamma == 1)
    out_ns = rms_norm(x)
    jax.block_until_ready(out_ns)
    assert jnp.allclose(out_ns, rms_norm_ref(x), atol=1e-5, rtol=1e-5)

    # Row count not a multiple of the tile -> exercises the pad/slice path and a multi-step grid.
    x_odd = jax.random.normal(kx2, (3, 37, D), jnp.float32)
    out_odd = rms_norm(x_odd, gamma, block_rows=64)
    jax.block_until_ready(out_odd)
    assert jnp.allclose(out_odd, rms_norm_ref(x_odd, gamma), atol=1e-5, rtol=1e-5)

    print("KERNEL_OK")
</pallas_src>

<mosaic_0001>
module attributes {stable_mosaic.version = 11 : i64} {
  func.func @_rmsnorm_kernel(%arg0: i32, %arg1: memref<16x128xf32, #tpu.memory_space<vmem>>, %arg2: memref<1x128xf32, #tpu.memory_space<vmem>>, %arg3: memref<16x128xf32, #tpu.memory_space<vmem>>) attributes {dimension_semantics = [#tpu.dimension_semantics<parallel>], iteration_bounds = array<i64: 1>, scalar_prefetch = 0 : i64, scratch_operands = 0 : i64, tpu.core_type = #tpu.core_type<tc>, window_params = [{transform_indices = @transform_0, window_bounds = array<i64: 16, 128>}, {pipeline_mode = #tpu.pipeline_mode<synchronous>, transform_indices = @transform_1, window_bounds = array<i64: 1, 128>}, {transform_indices = @transform_2, window_bounds = array<i64: 16, 128>}]} {
    %c0 = arith.constant 0 : index
    %c0_0 = arith.constant 0 : index
    %0 = vector.load %arg1[%c0, %c0_0] : memref<16x128xf32, #tpu.memory_space<vmem>>, vector<16x128xf32>
    %c0_1 = arith.constant 0 : index
    %c0_2 = arith.constant 0 : index
    %1 = vector.load %arg2[%c0_1, %c0_2] : memref<1x128xf32, #tpu.memory_space<vmem>>, vector<1x128xf32>
    %2 = arith.mulf %0, %0 : vector<16x128xf32>
    %cst = arith.constant dense<0.000000e+00> : vector<16xf32>
    %3 = vector.multi_reduction <add>, %2, %cst [1] : vector<16x128xf32> to vector<16xf32>
    %4 = vector.shape_cast %3 : vector<16xf32> to vector<16x1xf32>
    %cst_3 = arith.constant 1.000000e-24 : f32
    %5 = vector.broadcast %cst_3 : f32 to vector<16x1xf32>
    %6 = arith.maximumf %4, %5 : vector<16x1xf32>
    %7 = math.rsqrt %6 : vector<16x1xf32>
    %cst_4 = arith.constant 11.3137083 : f32
    %8 = vector.broadcast %cst_4 : f32 to vector<16x1xf32>
    %9 = arith.mulf %8, %7 : vector<16x1xf32>
    %10 = vector.broadcast %9 : vector<16x1xf32> to vector<16x128xf32>
    %11 = arith.mulf %0, %10 : vector<16x128xf32>
    %12 = vector.broadcast %1 : vector<1x128xf32> to vector<16x128xf32>
    %13 = arith.mulf %11, %12 : vector<16x128xf32>
    %c0_5 = arith.constant 0 : index
    %c0_6 = arith.constant 0 : index
    %14 = vector.load %arg3[%c0_5, %c0_6] : memref<16x128xf32, #tpu.memory_space<vmem>>, vector<16x128xf32>
    tpu.vector_store %arg3[%c0_5, %c0_6], %13 {strides = array<i32>} : memref<16x128xf32, #tpu.memory_space<vmem>>, vector<16x128xf32>,
    return
  }
  func.func @transform_0(%arg0: i32) -> (i32, i32) {
    %c0_i32 = arith.constant 0 : i32
    %c0_i32_0 = arith.constant 0 : i32
    return %arg0, %c0_i32 : i32, i32
  }
  func.func @transform_1(%arg0: i32) -> (i32, i32) {
    %c0_i32 = arith.constant 0 : i32
    %c0_i32_0 = arith.constant 0 : i32
    %c0_i32_1 = arith.constant 0 : i32
    return %c0_i32, %c0_i32_0 : i32, i32
  }
  func.func @transform_2(%arg0: i32) -> (i32, i32) {
    %c0_i32 = arith.constant 0 : i32
    %c0_i32_0 = arith.constant 0 : i32
    return %arg0, %c0_i32 : i32, i32
  }
}

</mosaic_0001>

<bundles_post_ra>
// kernel: tpu_custom_call.1
= control target key start
LH: loop header
LB: loop body
LE: loop exit
PB: predicated region body
PF: predicated region fallthrough
CT: control target
= control target key end

     0   :  { %7 = vsyncpa [#allocation3], 0  ;;  %s157_s0 = inlined_call_operand.hbm [shape: f32[16,128], index: 0, kind: input, shape index: {}]   ;;  %s158_s1 = inlined_call_operand.vmem [shape: f32[1,128], index: 1, kind: input, shape index: {}]   ;;  %s159_s2 = inlined_call_operand.hbm [shape: f32[16,128], index: 2, kind: output, shape index: {}]  }
   0x1   :  { %8 = vsyncpa [#allocation4], 0  ;;  %s123_s9 = smov [#allocation2]  }
   0x2   :  { %s14_s10 = sshll.u32 %s123_s9, 4  ;;  %s15_s10 = int_to_ptr.vmem [resolvable:$true] %s14_s10 }
   0x3   :  { %s87_s11 = scalar_lea.vmem %s15_s10, 256  ;;  %p92_p1 = scmp.lt.s32.totalorder %s15_s10, %s15_s10 }
   0x4   :  { %p88_p0 = scmp.ne.s32.totalorder %s15_s10, %s87_s11  ;;  %p93_p2 = scmp.lt.s32.totalorder %s87_s11, %s87_s11 }
   0x6   :  { %p94_p3 = por %p93_p2, %p92_p1 }
   0x8   :  { %p95_p4 = pnand %p94_p3, %p88_p0 }
   0xa   :  { %98 = shalt.err (!%p95_p4)
}
   0xb   :  { %s124_s12 = smov 128   ;;  %s125_s13 = smov 8  }
   0xc   :  { %20 = dma.hbm_to_vmem [thread:$0]  %s157_s0, 256, %s15_s10, [#allocation3], %s124_s12, %s124_s12, %s125_s13  }
   0xd   :  { %119 = dma.done.wait [#allocation3], 256  }
   0xe   :  { %120 = vsyncadd [#allocation3], 4294967040  ;;  %v26_v0 = vld [vmem:[#allocation2] sm:$0xff]  ;;  %v27_v1 = vld [vmem:[#allocation2 + $0x8] sm:$0xff]  ;;  %s126_s0 = smov [#allocation5]  }
   0xf   :  { %v29_v2 = vmul.f32 %v26_v0, %v26_v0  ;;  %v30_v3 = vmul.f32 %v27_v1, %v27_v1  ;;  %v70_v10 = vld [vmem:[%s158_s1] ss:$0 sm:$0xff]  ;;  %s58_s18 = sshll.u32 %s126_s0, 4  ;;  %s59_s18 = int_to_ptr.vmem [resolvable:$true] %s58_s18 }
  0x10   :  { %s99_s19 = scalar_lea.vmem %s59_s18, 256  ;;  %p104_p6 = scmp.lt.s32.totalorder %s59_s18, %s59_s18 }
  0x11   :  { %31 = vadd.xlane.f32.xlu0 %v29_v2  ;;  %p100_p5 = scmp.ne.s32.totalorder %s59_s18, %s99_s19  ;;  %p105_p7 = scmp.lt.s32.totalorder %s99_s19, %s99_s19 }
  0x13   :  { %p106_p8 = por %p105_p7, %p104_p6 }
  0x15   :  { %33 = vadd.xlane.f32.xlu0 %v30_v3  ;;  %p107_p9 = pnand %p106_p8, %p100_p5 }
  0x9a   :  { %v32_v4 = vpop.xlane.xlu0 %31 }
  0x9b   :  { %v35_v5 = vmax.f32 %v32_v4, 1e-24 }
  0x9d   :  { %75 = vrsqrt.f32 %v35_v5 }
  0x9e   :  { %v34_v6 = vpop.xlane.xlu0 %33 }
  0x9f   :  { %v36_v7 = vmax.f32 %v34_v6, 1e-24 }
  0xa1   :  { %77 = vrsqrt.f32 %v36_v7 }
  0xaa   :  { %v76_v8 = vpop.eup %75 }
  0xab   :  { %v39_v9 = vmul.f32 11.313708, %v76_v8 }
  0xad   :  { %v41_v11 = vmul.f32 %v39_v9, %v26_v0 }
  0xae   :  { %v78_v12 = vpop.eup %77 }
  0xaf   :  { %v40_v13 = vmul.f32 11.313708, %v78_v12  ;;  %v49_v14 = vmul.f32 %v70_v10, %v41_v11 }
  0xb1   :  { %v42_v15 = vmul.f32 %v40_v13, %v27_v1  ;;  %51 = vst [vmem:[#allocation5] sm:$0xff] %v49_v14 }
  0xb3   :  { %v50_v16 = vmul.f32 %v70_v10, %v42_v15 }
  0xb5   :  { %52 = vst [vmem:[#allocation5 + $0x8] sm:$0xff] %v50_v16 }
  0xb6   :  { %110 = shalt.err (!%p107_p9)
}
  0xb7   :  { %64 = dma.vmem_to_hbm [thread:$0]  %s59_s18, 256, %s159_s2, [#allocation4], %s124_s12, %s124_s12, %s125_s13  }
  0xb8   :  { %121 = dma.done.wait [#allocation4], 256  }
  0xb9   :  { %122 = vsyncadd [#allocation4], 4294967040 }
  0xba   :  { %68 = vsyncpa [#allocation3], 1 }
  0xbb   :  { %69 = vsyncpa [#allocation4], 1 }

</bundles_post_ra>
